<compile_context>
chip_gen: v7x
topology: tpu7x:2x2x1
jax: 0.10.0
libtpu: 0.0.40
codegen_flags: <defaults>
</compile_context>

<pallas_src>
import math

import jax
import jax.numpy as jnp
from jax.experimental import pallas as pl
from jax.experimental.pallas import tpu as pltpu


_LANE = 128                       # TPU lane width (minor vreg dim)
_TILE_BYTES = 4 * 1024 * 1024     # ~4 MiB per tile; 2x in + 2x out buffers = 16 MiB
_VMEM_LIMIT = 32 * 1024 * 1024    # scoped-VMEM request, safe on v5e / v6e / v7x
_MIN_PALLAS_BYTES = 64 * 1024     # below this + lane-sparse: XLA is at least as good


# ----------------------------------------------------------------------------
# Pallas kernel: transpose the last two dims of a (B, M, N) tensor -> (B, N, M)
# ----------------------------------------------------------------------------

def _transpose_kernel(x_ref, o_ref):
    # x_ref: (tb, tm, tn) VMEM tile, o_ref: (tb, tn, tm) VMEM tile.
    # Batched minor-dims transpose runs on the XLU; BlockSpec machinery does all
    # the HBM<->VMEM movement.  jnp.swapaxes, not .T (.T would reverse all axes).
    # TODO(synk): on v7x (3.2 TB/s HBM, 2 XLUs) verify with a bundle dump whether
    # vxpose becomes the binding unit; if so, split the per-tile transpose into
    # sub-tiles interleaved with stores.
    o_ref[...] = jnp.swapaxes(x_ref[...], -1, -2)


def _round_down_lane(v):
    return max(_LANE, (v // _LANE) * _LANE)


def _pick_mn_tiles(m, n, itemsize):
    """Pick (tm, tn): each is the full dim or a 128-multiple tile, sized so
    tm*tn*itemsize stays near _TILE_BYTES (bytes-per-tile constant across dtypes)."""
    if m * n * itemsize <= _TILE_BYTES:
        return m, n                         # whole (m, n) slab fits the budget
    cap = _round_down_lane(int(math.isqrt(_TILE_BYTES // itemsize)))
    tm = m if m <= cap else cap
    tn = n if n <= cap else cap
    # If one dim is fully resident, give its leftover byte budget to the other.
    if tm == m and tn < n:
        tn = _round_down_lane(_TILE_BYTES // (itemsize * tm))
    elif tn == n and tm < m:
        tm = _round_down_lane(_TILE_BYTES // (itemsize * tn))
    return tm, tn


def pallas_transpose_last2(x):
    """Swap the last two axes of `x` with a tiled, batch-blocked Pallas TPU kernel."""
    *lead, m, n = x.shape
    b = math.prod(lead) if lead else 1
    x3 = x.reshape(b, m, n)
    itemsize = jnp.dtype(x.dtype).itemsize

    tm, tn = _pick_mn_tiles(m, n, itemsize)

    # Batch-block: fold batch slices into the tile until it reaches ~_TILE_BYTES so
    # per-grid-step overhead and tiny DMA descriptors don't dominate small (m, n).
    slab = tm * tn * itemsize
    tb = max(1, min(b, _TILE_BYTES // max(slab, 1)))
    # v7x has two TensorCores: keep the batch grid axis >= 2 whenever there is more
    # than one batch slice so both cores get work (costs at most one extra step).
    if tb >= b and b > 1:
        tb = (b + 1) // 2

    grid = (pl.cdiv(b, tb), pl.cdiv(n, tn), pl.cdiv(m, tm))  # iterate OUTPUT blocks

    out = pl.pallas_call(
        _transpose_kernel,
        out_shape=jax.ShapeDtypeStruct((b, n, m), x.dtype),
        grid=grid,
        in_specs=[
            # input block (tb, tm, tn) at (batch bb, row-block j, col-block i)
            pl.BlockSpec((tb, tm, tn), lambda bb, i, j: (bb, j, i)),
        ],
        # output block (tb, tn, tm) at (batch bb, row-block i, col-block j)
        out_specs=pl.BlockSpec((tb, tn, tm), lambda bb, i, j: (bb, i, j)),
        compiler_params=pltpu.CompilerParams(
            dimension_semantics=("parallel", "parallel", "parallel"),
            vmem_limit_bytes=_VMEM_LIMIT,
        ),
    )(x3)

    return out.reshape(*lead, n, m)


# ----------------------------------------------------------------------------
# Module wrapper (mirrors the PyTorch Transpose module)
# ----------------------------------------------------------------------------

class Transpose:
    def __init__(self, *dims, contiguous=False):
        assert len(dims) == 2, "Transpose expects exactly two dims"
        self.dims = dims
        # `contiguous` only changes physical layout in PyTorch; the Pallas path
        # always materializes a fresh (contiguous) array, so values are identical.
        self.contiguous = contiguous

    def __call__(self, x):
        nd = x.ndim
        d0, d1 = sorted((self.dims[0] % nd, self.dims[1] % nd))
        if d0 == d1:
            return x
        if (d0, d1) == (nd - 2, nd - 1):
            m, n = x.shape[-2], x.shape[-1]
            itemsize = jnp.dtype(x.dtype).itemsize
            lead = math.prod(x.shape[:-2]) if nd > 2 else 1
            lane_dense = (m >= _LANE) and (n >= _LANE)
            blocked_large = lead * m * n * itemsize >= _MIN_PALLAS_BYTES
            if lane_dense or blocked_large:
                # Hot case (Transpose(1, 2) on (B, L, D), Transpose(-1, -2), ...):
                # real data movement across lane/sublane layout -> Pallas kernel.
                return pallas_transpose_last2(x)
            # Tiny and lane-sparse: every HBM write run is < 512 B no matter who
            # does it; a standalone Pallas kernel cannot beat XLA here.
            # TODO(synk): in PatchTST_sepcmix this Transpose brackets BatchNorm1d;
            # the real win is fusing it into that kernel rather than standalone.
            return jnp.swapaxes(x, d0, d1)
        # TODO(synk): swaps that do not touch the last two (lane/sublane) dims are
        # pure layout permutations with no per-element compute; a Pallas kernel
        # would only add an HBM round-trip, so they are left to XLA's transpose.
        return jnp.swapaxes(x, d0, d1)

    # torch-style alias
    forward = __call__


# ----------------------------------------------------------------------------
# Demo / correctness check
# ----------------------------------------------------------------------------

if __name__ == "__main__":
    key = jax.random.PRNGKey(0)
    k1, k2, k3, k4 = jax.random.split(key, 4)

    # 1) Module-realistic hot case: Transpose(1, 2) on (bs*nvars, patch_num, d_model),
    #    batch-blocked Pallas path (one ~32 KiB block per grid step instead of 8 tiny ones).
    x1 = jax.random.normal(k1, (8, 16, 128), jnp.float32)
    y1 = Transpose(1, 2, contiguous=True)(x1)
    jax.block_until_ready(y1)
    assert y1.shape == (8, 128, 16)
    assert bool(jnp.array_equal(y1, jnp.swapaxes(x1, 1, 2)))
    # ... and back (the module is used in both directions around BatchNorm1d).
    y1b = Transpose(1, 2)(y1)
    jax.block_until_ready(y1b)
    assert bool(jnp.array_equal(y1b, x1))

    # 2) Lane-dense bf16 case (dtype-aware tiling); whole slab fits one tile.
    x2 = jax.random.normal(k2, (2, 256, 384), jnp.bfloat16)
    y2 = Transpose(-1, -2)(x2)
    jax.block_until_ready(y2)
    assert y2.shape == (2, 384, 256)
    assert bool(jnp.array_equal(y2, jnp.swapaxes(x2, -1, -2)))

    # 3) Multi-tile case with ragged edges in both minor dims (padding/masking path,
    #    1024x1024 f32 tiles, grid (1, 2, 2)).
    x3 = jax.random.normal(k3, (1, 1536, 1280), jnp.float32)
    y3 = Transpose(1, 2)(x3)
    jax.block_until_ready(y3)
    assert y3.shape == (1, 1280, 1536)
    assert bool(jnp.array_equal(y3, jnp.swapaxes(x3, 1, 2)))

    # 4) Rank-4 tiny lane-sparse input -> lane-density guard sends it to XLA.
    x4 = jax.random.normal(k4, (2, 4, 16, 16), jnp.float32)
    y4 = Transpose(2, 3)(x4)
    jax.block_until_ready(y4)
    assert y4.shape == (2, 4, 16, 16)
    assert bool(jnp.array_equal(y4, jnp.swapaxes(x4, 2, 3)))

    # 5) Swap not involving the minor dims -> pure layout permute (XLA fallback).
    y5 = Transpose(0, 1)(x1)
    jax.block_until_ready(y5)
    assert y5.shape == (16, 8, 128)
    assert bool(jnp.array_equal(y5, jnp.swapaxes(x1, 0, 1)))

    print("KERNEL_OK")
</pallas_src>

<mosaic_0001>
module attributes {stable_mosaic.version = 11 : i64} {
  func.func @_transpose_kernel(%arg0: i32, %arg1: i32, %arg2: i32, %arg3: memref<4x16x128xf32, #tpu.memory_space<vmem>>, %arg4: memref<4x128x16xf32, #tpu.memory_space<vmem>>) attributes {dimension_semantics = [#tpu.dimension_semantics<parallel>, #tpu.dimension_semantics<parallel>, #tpu.dimension_semantics<parallel>], iteration_bounds = array<i64: 2, 1, 1>, scalar_prefetch = 0 : i64, scratch_operands = 0 : i64, tpu.core_type = #tpu.core_type<tc>, window_params = [{transform_indices = @transform_0, window_bounds = array<i64: 4, 16, 128>}, {transform_indices = @transform_1, window_bounds = array<i64: 4, 128, 16>}]} {
    %c0 = arith.constant 0 : index
    %c0_0 = arith.constant 0 : index
    %c0_1 = arith.constant 0 : index
    %0 = vector.load %arg3[%c0, %c0_0, %c0_1] : memref<4x16x128xf32, #tpu.memory_space<vmem>>, vector<4x16x128xf32>
    %1 = tpu.transpose %0, [0, 2, 1] : vector<4x16x128xf32> -> vector<4x128x16xf32>
    %c0_2 = arith.constant 0 : index
    %c0_3 = arith.constant 0 : index
    %c0_4 = arith.constant 0 : index
    %2 = vector.load %arg4[%c0_2, %c0_3, %c0_4] : memref<4x128x16xf32, #tpu.memory_space<vmem>>, vector<4x128x16xf32>
    tpu.vector_store %arg4[%c0_2, %c0_3, %c0_4], %1 {strides = array<i32>} : memref<4x128x16xf32, #tpu.memory_space<vmem>>, vector<4x128x16xf32>,
    return
  }
  func.func @transform_0(%arg0: i32, %arg1: i32, %arg2: i32) -> (i32, i32, i32) {
    %c0_i32 = arith.constant 0 : i32
    return %arg0, %arg2, %arg1 : i32, i32, i32
  }
  func.func @transform_1(%arg0: i32, %arg1: i32, %arg2: i32) -> (i32, i32, i32) {
    %c0_i32 = arith.constant 0 : i32
    return %arg0, %arg1, %arg2 : i32, i32, i32
  }
}

</mosaic_0001>

<bundles_post_ra>
// kernel: tpu_custom_call.1
= control target key start
LH: loop header
LB: loop body
LE: loop exit
PB: predicated region body
PF: predicated region fallthrough
CT: control target
= control target key end

     0   :  { %6 = vsyncpa [#allocation3], 0  ;;  %s925_s0 = inlined_call_operand.hbm [shape: f32[8,16,128], index: 0, kind: input, shape index: {}]   ;;  %s926_s1 = inlined_call_operand.vmem [shape: f32[8,128,16], index: 1, kind: output, shape index: {}]  }
   0x1   :  { %8 = vsyncpa [#allocation3 + $0x1], 0  ;;  %s672_s6 = smov 0   ;;  %s674_s7 = smov 0  }
   0x2   :  { %s676_s8 = smov 0   ;;  %s678_s9 = smov 0  }
   0x3   :  { %s680_s10 = smov 0   ;;  %s682_s11 = smov 0  }
   0x4 LB: > { %s501_s12 = sadd.s32 4294967295, %s657_s11   ;;  %s33_s13 = sadd.s32 1, %s653_s10  ;;  %s657_s11 = sphi %s682_s11, %s14_s11   ;;  %s653_s10 = sphi %s680_s10, %s934_s10   ;;  %s649_s9 = sphi %s678_s9, %s933_s9   ;;  %s645_s8 = sphi %s676_s8, %s932_s8   ;;  %s641_s7 = sphi %s674_s7, %s931_s7   ;;  %s637_s6 = sphi %s672_s6, %s930_s6  }
   0x5   : > { %p35_p0 = scmp.ge.s32.totalorder %s33_s13, 2  ;;  %s44_s14 = sadd.s32 1, %s645_s8 }
   0x6   : > { %p51_p1 = scmp.ne.s32.totalorder %s645_s8, %s641_s7  ;;  %p52_p2 = scmp.eq.s32.totalorder %s657_s11, 0 }
   0x7   : > { %s936_s13 = smov (%p35_p0, %s33_s13), 0  ;;  %p57_p4 = scmp.ne.s32.totalorder %s641_s7, %s637_s6 }
   0x8   : > { %p708_p3 = por %p52_p2, %p51_p1  ;;  %s37_s16 = ssub.s32 %s653_s10, %s936_s13 }
   0x9   : > { %p58_p5 = scmp.eq.s32.totalorder %s501_s12, 0  ;;  %p42_p6 = scmp.eq.s32.totalorder %s37_s16, 0 }
   0xa   : > { %p525_p8 = scmp.lt.s32.totalorder %s657_s11, 2  ;;  %s111_s19 = sand.u32 1, %s645_s8  }
   0xb   : > { %p715_p7 = por %p58_p5, %p57_p4  ;;  %s517_s20 = sshll.u32 %s653_s10, 10 }
   0xc   : > { %s721_s18 = scalar_select %p42_p6, %s645_s8, %s44_s14  }
   0xd   : > { %s505_s21 = sshll.u32 %s111_s19, 6  ;;  %s728_s24 = scalar_lea.hbm %s925_s0, %s517_s20 }
   0xe   : > { %s115_s25 = scalar_lea.vmem [#allocation2], %s505_s21  ;;  %p732_p9 = pnand %p525_p8, %p708_p3 }
   0xf   : > { %s126_s26 = sshll.u32 %s115_s25, 4  ;;  %s738_s28 = scalar_lea.sflag [#allocation3], %s111_s19  ;;  %s736_s26 = int_to_ptr.vmem [resolvable:$true] %s126_s26 }
  0x10   : > { %s577_s29 = scalar_lea.hbm %s728_s24, 1024  ;;  %p579_p11 = pneg %p732_p9 }
  0x11   : > { %p578_p10 = scmp.ne.s32.totalorder %s728_s24, %s577_s29  ;;  %s582_s3 = scalar_lea.hbm %s925_s0, 2048 }
  0x12   : > { %p583_p0 = scmp.lt.u32.totalorder %s728_s24, %s925_s0  ;;  %p584_p1 = scmp.lt.u32.totalorder %s582_s3, %s577_s29 }
  0x13   : > { %p580_p12 = pnand %p579_p11, %p578_p10  ;;  %p586_p3 = scmp.lt.u32.totalorder %s577_s29, %s728_s24 }
  0x14   : > { %p585_p2 = por %p584_p1, %p583_p0 }
  0x15   : > { %p581_p13 = pneg %p580_p12 }
  0x16   : > { %p587_p4 = por %p586_p3, %p585_p2 }
  0x18   : > { %p588_p5 = pnand %p587_p4, %p581_p13 }
  0x1a   : > { %591 = shalt.err (!%p588_p5)
}
  0x1b   : > { %s592_s6 = scalar_lea.vmem %s736_s26, 1024  ;;  %s659_s12 = smov [#allocation2]  }
  0x1c   : > { %p593_p6 = scmp.ne.s32.totalorder %s736_s26, %s592_s6  ;;  %s597_s14 = sshll.u32 %s659_s12, 4  ;;  %s598_s14 = int_to_ptr.vmem [resolvable:$false] %s597_s14 }
  0x1d   : > { %s599_s15 = scalar_lea.vmem %s598_s14, 2048  ;;  %p600_p12 = scmp.lt.s32.totalorder %s736_s26, %s598_s14 }
  0x1e   : > { %p595_p8 = pnand %p593_p6, %p579_p11  ;;  %p601_p0 = scmp.lt.s32.totalorder %s599_s15, %s592_s6 }
  0x20   : > { %p596_p10 = pneg %p595_p8  ;;  %p602_p1 = por %p601_p0, %p600_p12 }
  0x22   : > { %p603_p2 = pnand %p602_p1, %p596_p10 }
  0x24   : > { %606 = shalt.err (!%p603_p2)
}
  0x25   : > { %s660_s16 = smov 128   ;;  %s661_s19 = smov 8  }
  0x26   : > { %524 = dma.hbm_to_vmem [thread:$0]  (!%p732_p9), %s728_s24, 1024, %s736_s26, %s738_s28, %s660_s16, %s660_s16, %s661_s19  }
  0x27   : > { %p509_p11 = scmp.ge.s32.totalorder %s657_s11, 1  ;;  %p134_p13 = scmp.lt.s32.totalorder %s657_s11, 3 }
  0x29   : > { %p135_p3 = pnand %p509_p11, %p134_p13 }
  0x2a   : > { %s140_s20 = sand.u32 (!%p135_p3), 1, %s641_s7  }
  0x2b   : > { %138 = sbr.rel (%p135_p3) target bundleno = 306 (0x132), region = 24  ;;  %s510_s21 = sshll.u32 (!%p135_p3), %s140_s20, 6 }
  0x2c   : > { %s141_s22 = scalar_lea.sflag (!%p135_p3), [#allocation3], %s140_s20  ;;  %s144_s23 = scalar_lea.vmem (!%p135_p3), [#allocation2], %s510_s21 }
  0x32   : > { %632 = dma.done.wait (%p715_p7), %s141_s22, 1024  }
  0x33   : > { %634 = vsyncadd (%p715_p7), %s141_s22, 4294966272  ;;  %v188_v0 = vld [vmem:[%s144_s23] sm:$0xff]  ;;  %v190_v1 = vld [vmem:[%s144_s23 + $0x10] sm:$0xff]  ;;  %s511_s24 = sshll.u32 %s649_s9, 2  ;;  %vm324_vm0 = vcmask 130048  }
  0x34   : > { %196 = vxpose.xlu0.b32.start [1/2] (short) %v188_v0, 128  ;;  %228 = vxpose.xlu1.b32.start [1/2] (short) %v190_v1, 128  ;;  %v189_v2 = vld [vmem:[%s144_s23 + $0x8] sm:$0xff]  ;;  %v191_v3 = vld [vmem:[%s144_s23 + $0x18] sm:$0xff]  ;;  %v192_v4 = vld [vmem:[%s144_s23 + $0x20] sm:$0xff]  ;;  %p175_p9 = scmp.lt.s32.totalorder %s511_s24, 7 }
  0x35   : > { %v194_v5 = vld [vmem:[%s144_s23 + $0x30] sm:$0xff]  ;;  %v193_v6 = vld [vmem:[%s144_s23 + $0x28] sm:$0xff]  ;;  %v195_v7 = vld [vmem:[%s144_s23 + $0x38] sm:$0xff] }
  0x36   : > { %s938_s24 = smov (!%p175_p9, %s511_s24), 7 }
  0x37   : > { %s518_s17 = sshll.u32 %s938_s24, 7 }
  0x38   : > { %197 = vxpose.xlu0.b32.end [2/2] (short) %v189_v2, 128  ;;  %229 = vxpose.xlu1.b32.end [2/2] (short) %v191_v3, 128  ;;  %s777_s27 = scalar_lea.vmem %s926_s1, %s518_s17 }
  0x71   : > { %260 = vxpose.xlu0.b32.start [1/2] (short) %v192_v4, 128  ;;  %292 = vxpose.xlu1.b32.start [1/2] (short) %v194_v5, 128 }
  0x75   : > { %261 = vxpose.xlu0.b32.end [2/2] (short) %v193_v6, 128  ;;  %293 = vxpose.xlu1.b32.end [2/2] (short) %v195_v7, 128 }
  0xb4   : > { %v212_v8 = vpop.trf.xlu0  ;;  %v244_v9 = vpop.trf.xlu1 }
  0xb5   : > { %325 = vst.msk [vmem:[%s777_s27] sm:$0xff] %vm324_vm0, %v212_v8  ;;  %341 = vst.msk [vmem:[%s777_s27 + $0x80] sm:$0xff] %vm324_vm0, %v244_v9 }
  0xb8   : > { %v213_v10 = vpop.trf.xlu0  ;;  %v245_v11 = vpop.trf.xlu1 }
  0xb9   : > { %326 = vst.msk [vmem:[%s777_s27 + $0x8] sm:$0xff] %vm324_vm0, %v213_v10  ;;  %342 = vst.msk [vmem:[%s777_s27 + $0x88] sm:$0xff] %vm324_vm0, %v245_v11 }
  0xbc   : > { %v214_v12 = vpop.trf.xlu0  ;;  %v246_v13 = vpop.trf.xlu1 }
  0xbd   : > { %327 = vst.msk [vmem:[%s777_s27 + $0x10] sm:$0xff] %vm324_vm0, %v214_v12  ;;  %343 = vst.msk [vmem:[%s777_s27 + $0x90] sm:$0xff] %vm324_vm0, %v246_v13 }
  0xc0   : > { %v215_v14 = vpop.trf.xlu0  ;;  %v247_v15 = vpop.trf.xlu1 }
  0xc1   : > { %328 = vst.msk [vmem:[%s777_s27 + $0x18] sm:$0xff] %vm324_vm0, %v215_v14  ;;  %344 = vst.msk [vmem:[%s777_s27 + $0x98] sm:$0xff] %vm324_vm0, %v247_v15 }
  0xc4   : > { %v216_v16 = vpop.trf.xlu0  ;;  %v248_v17 = vpop.trf.xlu1 }
  0xc5   : > { %329 = vst.msk [vmem:[%s777_s27 + $0x20] sm:$0xff] %vm324_vm0, %v216_v16  ;;  %345 = vst.msk [vmem:[%s777_s27 + $0xa0] sm:$0xff] %vm324_vm0, %v248_v17 }
  0xc8   : > { %v217_v18 = vpop.trf.xlu0  ;;  %v249_v19 = vpop.trf.xlu1 }
  0xc9   : > { %330 = vst.msk [vmem:[%s777_s27 + $0x28] sm:$0xff] %vm324_vm0, %v217_v18  ;;  %346 = vst.msk [vmem:[%s777_s27 + $0xa8] sm:$0xff] %vm324_vm0, %v249_v19 }
  0xcc   : > { %v218_v20 = vpop.trf.xlu0  ;;  %v250_v21 = vpop.trf.xlu1 }
  0xcd   : > { %331 = vst.msk [vmem:[%s777_s27 + $0x30] sm:$0xff] %vm324_vm0, %v218_v20  ;;  %347 = vst.msk [vmem:[%s777_s27 + $0xb0] sm:$0xff] %vm324_vm0, %v250_v21 }
  0xd0   : > { %v219_v22 = vpop.trf.xlu0  ;;  %v251_v23 = vpop.trf.xlu1 }
  0xd1   : > { %332 = vst.msk [vmem:[%s777_s27 + $0x38] sm:$0xff] %vm324_vm0, %v219_v22  ;;  %348 = vst.msk [vmem:[%s777_s27 + $0xb8] sm:$0xff] %vm324_vm0, %v251_v23 }
  0xd4   : > { %v220_v24 = vpop.trf.xlu0  ;;  %v252_v25 = vpop.trf.xlu1 }
  0xd5   : > { %333 = vst.msk [vmem:[%s777_s27 + $0x40] sm:$0xff] %vm324_vm0, %v220_v24  ;;  %349 = vst.msk [vmem:[%s777_s27 + $0xc0] sm:$0xff] %vm324_vm0, %v252_v25 }
  0xd8   : > { %v221_v26 = vpop.trf.xlu0  ;;  %v253_v27 = vpop.trf.xlu1 }
  0xd9   : > { %334 = vst.msk [vmem:[%s777_s27 + $0x48] sm:$0xff] %vm324_vm0, %v221_v26  ;;  %350 = vst.msk [vmem:[%s777_s27 + $0xc8] sm:$0xff] %vm324_vm0, %v253_v27 }
  0xdc   : > { %v222_v28 = vpop.trf.xlu0  ;;  %v254_v29 = vpop.trf.xlu1 }
  0xdd   : > { %335 = vst.msk [vmem:[%s777_s27 + $0x50] sm:$0xff] %vm324_vm0, %v222_v28  ;;  %351 = vst.msk [vmem:[%s777_s27 + $0xd0] sm:$0xff] %vm324_vm0, %v254_v29 }
  0xe0   : > { %v223_v30 = vpop.trf.xlu0  ;;  %v255_v31 = vpop.trf.xlu1 }
  0xe1   : > { %336 = vst.msk [vmem:[%s777_s27 + $0x58] sm:$0xff] %vm324_vm0, %v223_v30  ;;  %352 = vst.msk [vmem:[%s777_s27 + $0xd8] sm:$0xff] %vm324_vm0, %v255_v31 }
  0xe4   : > { %v224_v32 = vpop.trf.xlu0  ;;  %v256_v33 = vpop.trf.xlu1 }
  0xe5   : > { %337 = vst.msk [vmem:[%s777_s27 + $0x60] sm:$0xff] %vm324_vm0, %v224_v32  ;;  %353 = vst.msk [vmem:[%s777_s27 + $0xe0] sm:$0xff] %vm324_vm0, %v256_v33 }
  0xe8   : > { %v225_v34 = vpop.trf.xlu0  ;;  %v257_v35 = vpop.trf.xlu1 }
  0xe9   : > { %338 = vst.msk [vmem:[%s777_s27 + $0x68] sm:$0xff] %vm324_vm0, %v225_v34  ;;  %354 = vst.msk [vmem:[%s777_s27 + $0xe8] sm:$0xff] %vm324_vm0, %v257_v35 }
  0xec   : > { %v226_v36 = vpop.trf.xlu0  ;;  %v258_v37 = vpop.trf.xlu1 }
  0xed   : > { %339 = vst.msk [vmem:[%s777_s27 + $0x70] sm:$0xff] %vm324_vm0, %v226_v36  ;;  %355 = vst.msk [vmem:[%s777_s27 + $0xf0] sm:$0xff] %vm324_vm0, %v258_v37 }
  0xf0   : > { %v227_v38 = vpop.trf.xlu0  ;;  %v259_v39 = vpop.trf.xlu1 }
  0xf1   : > { %340 = vst.msk [vmem:[%s777_s27 + $0x78] sm:$0xff] %vm324_vm0, %v227_v38  ;;  %356 = vst.msk [vmem:[%s777_s27 + $0xf8] sm:$0xff] %vm324_vm0, %v259_v39 }
  0xf4   : > { %v276_v40 = vpop.trf.xlu0  ;;  %v308_v41 = vpop.trf.xlu1 }
  0xf5   : > { %357 = vst.msk [vmem:[%s777_s27 + $0x100] sm:$0xff] %vm324_vm0, %v276_v40  ;;  %373 = vst.msk [vmem:[%s777_s27 + $0x180] sm:$0xff] %vm324_vm0, %v308_v41 }
  0xf8   : > { %v277_v42 = vpop.trf.xlu0  ;;  %v309_v43 = vpop.trf.xlu1 }
  0xf9   : > { %358 = vst.msk [vmem:[%s777_s27 + $0x108] sm:$0xff] %vm324_vm0, %v277_v42  ;;  %374 = vst.msk [vmem:[%s777_s27 + $0x188] sm:$0xff] %vm324_vm0, %v309_v43 }
  0xfc   : > { %v278_v44 = vpop.trf.xlu0  ;;  %v310_v45 = vpop.trf.xlu1 }
  0xfd   : > { %359 = vst.msk [vmem:[%s777_s27 + $0x110] sm:$0xff] %vm324_vm0, %v278_v44  ;;  %375 = vst.msk [vmem:[%s777_s27 + $0x190] sm:$0xff] %vm324_vm0, %v310_v45 }
 0x100   : > { %v279_v46 = vpop.trf.xlu0  ;;  %v311_v47 = vpop.trf.xlu1 }
 0x101   : > { %360 = vst.msk [vmem:[%s777_s27 + $0x118] sm:$0xff] %vm324_vm0, %v279_v46  ;;  %376 = vst.msk [vmem:[%s777_s27 + $0x198] sm:$0xff] %vm324_vm0, %v311_v47 }
 0x104   : > { %v280_v48 = vpop.trf.xlu0  ;;  %v312_v49 = vpop.trf.xlu1 }
 0x105   : > { %361 = vst.msk [vmem:[%s777_s27 + $0x120] sm:$0xff] %vm324_vm0, %v280_v48  ;;  %377 = vst.msk [vmem:[%s777_s27 + $0x1a0] sm:$0xff] %vm324_vm0, %v312_v49 }
 0x108   : > { %v281_v50 = vpop.trf.xlu0  ;;  %v313_v51 = vpop.trf.xlu1 }
 0x109   : > { %362 = vst.msk [vmem:[%s777_s27 + $0x128] sm:$0xff] %vm324_vm0, %v281_v50  ;;  %378 = vst.msk [vmem:[%s777_s27 + $0x1a8] sm:$0xff] %vm324_vm0, %v313_v51 }
 0x10c   : > { %v282_v52 = vpop.trf.xlu0  ;;  %v314_v53 = vpop.trf.xlu1 }
 0x10d   : > { %363 = vst.msk [vmem:[%s777_s27 + $0x130] sm:$0xff] %vm324_vm0, %v282_v52  ;;  %379 = vst.msk [vmem:[%s777_s27 + $0x1b0] sm:$0xff] %vm324_vm0, %v314_v53 }
 0x110   : > { %v283_v54 = vpop.trf.xlu0  ;;  %v315_v55 = vpop.trf.xlu1 }
 0x111   : > { %364 = vst.msk [vmem:[%s777_s27 + $0x138] sm:$0xff] %vm324_vm0, %v283_v54  ;;  %380 = vst.msk [vmem:[%s777_s27 + $0x1b8] sm:$0xff] %vm324_vm0, %v315_v55 }
 0x114   : > { %v284_v56 = vpop.trf.xlu0  ;;  %v316_v57 = vpop.trf.xlu1 }
 0x115   : > { %365 = vst.msk [vmem:[%s777_s27 + $0x140] sm:$0xff] %vm324_vm0, %v284_v56  ;;  %381 = vst.msk [vmem:[%s777_s27 + $0x1c0] sm:$0xff] %vm324_vm0, %v316_v57 }
 0x118   : > { %v285_v58 = vpop.trf.xlu0  ;;  %v317_v59 = vpop.trf.xlu1 }
 0x119   : > { %366 = vst.msk [vmem:[%s777_s27 + $0x148] sm:$0xff] %vm324_vm0, %v285_v58  ;;  %382 = vst.msk [vmem:[%s777_s27 + $0x1c8] sm:$0xff] %vm324_vm0, %v317_v59 }
 0x11c   : > { %v286_v60 = vpop.trf.xlu0  ;;  %v318_v61 = vpop.trf.xlu1 }
 0x11d   : > { %367 = vst.msk [vmem:[%s777_s27 + $0x150] sm:$0xff] %vm324_vm0, %v286_v60  ;;  %383 = vst.msk [vmem:[%s777_s27 + $0x1d0] sm:$0xff] %vm324_vm0, %v318_v61 }
 0x120   : > { %v287_v62 = vpop.trf.xlu0  ;;  %v319_v63 = vpop.trf.xlu1 }
 0x121   : > { %368 = vst.msk [vmem:[%s777_s27 + $0x158] sm:$0xff] %vm324_vm0, %v287_v62  ;;  %384 = vst.msk [vmem:[%s777_s27 + $0x1d8] sm:$0xff] %vm324_vm0, %v319_v63 }
 0x124   : > { %v288_v0 = vpop.trf.xlu0  ;;  %v320_v1 = vpop.trf.xlu1 }
 0x125   : > { %369 = vst.msk [vmem:[%s777_s27 + $0x160] sm:$0xff] %vm324_vm0, %v288_v0  ;;  %385 = vst.msk [vmem:[%s777_s27 + $0x1e0] sm:$0xff] %vm324_vm0, %v320_v1 }
 0x128   : > { %v289_v2 = vpop.trf.xlu0  ;;  %v321_v3 = vpop.trf.xlu1 }
 0x129   : > { %370 = vst.msk [vmem:[%s777_s27 + $0x168] sm:$0xff] %vm324_vm0, %v289_v2  ;;  %386 = vst.msk [vmem:[%s777_s27 + $0x1e8] sm:$0xff] %vm324_vm0, %v321_v3 }
 0x12c   : > { %v290_v4 = vpop.trf.xlu0  ;;  %v322_v5 = vpop.trf.xlu1 }
 0x12d   : > { %371 = vst.msk [vmem:[%s777_s27 + $0x170] sm:$0xff] %vm324_vm0, %v290_v4  ;;  %387 = vst.msk [vmem:[%s777_s27 + $0x1f0] sm:$0xff] %vm324_vm0, %v322_v5 }
 0x130   : > { %v291_v6 = vpop.trf.xlu0  ;;  %v323_v7 = vpop.trf.xlu1 }
 0x131   : > { %372 = vst.msk [vmem:[%s777_s27 + $0x178] sm:$0xff] %vm324_vm0, %v291_v6  ;;  %388 = vst.msk [vmem:[%s777_s27 + $0x1f8] sm:$0xff] %vm324_vm0, %v323_v7 }
 0x132 PF: > { %s14_s11 = sadd.s32 1, %s657_s11   ;;  %s930_s6 = smov %s641_s7 }
 0x133   : > { %p11_p7 = scmp.ge.s32.totalorder %s14_s11, 4   ;;  %s931_s7 = smov %s645_s8 }
 0x134   : > { %s932_s8 = smov %s721_s18  ;;  %s933_s9 = smov %s653_s10 }
 0x135   : > { %s934_s10 = smov %s936_s13  ;;  %13 = sbr.rel (!%p11_p7) target bundleno = 4 (0x4), region = 64 }
 0x13c   :  { %428 = vsyncpa [#allocation3], 1 }
 0x13d   :  { %430 = vsyncpa [#allocation3 + $0x1], 1 }

</bundles_post_ra>
